<compile_context>
chip_gen: v5e
topology: v5e:2x2
jax: 0.10.0
libtpu: 0.0.40
codegen_flags: <defaults>
</compile_context>

<pallas_src>
import functools
import numpy as np

import jax
import jax.numpy as jnp
from jax.experimental import pallas as pl
from jax.experimental.pallas import tpu as pltpu


_VMEM_SPEC = pl.BlockSpec(memory_space=pltpu.MemorySpace.VMEM)
_SMEM_SPEC = pl.BlockSpec(memory_space=pltpu.MemorySpace.SMEM)
_SCALAR_OUT = jax.ShapeDtypeStruct((1, 1), jnp.float32)


def _round_up(x, m):
    return ((x + m - 1) // m) * m


# ----------------------------------------------------------------------------
# Fused focal-classification + cardinality kernel
# ----------------------------------------------------------------------------
def _cls_fused_kernel(logits_ref, cls_ref, focal_ref, card_ref, *, alpha):
    """One pass over a (1, TQ, C) logits tile.

    focal_ref : (1, 1)  SMEM f32   -- running sum of focal loss over everything
    card_ref  : (B, 1)  SMEM f32   -- running per-batch count of non-background preds
    cls_ref   : (1, TQ, 1) int32   -- class id per query; num_classes = background,
                                      -1 marks Q-padding rows (fully masked out).
    """
    b = pl.program_id(0)
    q = pl.program_id(1)

    @pl.when(jnp.logical_and(b == 0, q == 0))
    def _():
        focal_ref[0, 0] = jnp.float32(0.0)

    @pl.when(q == 0)
    def _():
        card_ref[b, 0] = jnp.float32(0.0)

    x = logits_ref[...].astype(jnp.float32)            # (1, TQ, C)
    cls = cls_ref[...]                                  # (1, TQ, 1) int32
    C = x.shape[-1]

    class_iota = jax.lax.broadcasted_iota(jnp.int32, x.shape, 2)
    t = (class_iota == cls).astype(jnp.float32)         # one-hot built in-kernel
    valid = (cls >= 0).astype(jnp.float32)               # (1, TQ, 1)

    # ---- sigmoid focal loss (gamma == 2), single exp reused everywhere ----
    e = jnp.exp(-jnp.abs(x))                             # exp(-|x|)
    r = pl.reciprocal(1.0 + e, approx=True)
    prob = jnp.where(x >= 0.0, r, e * r)                 # sigmoid(x)
    # binary_cross_entropy_with_logits, numerically-stable form (matches PyTorch)
    ce = jnp.maximum(x, 0.0) - x * t + jnp.log(1.0 + e)
    p_t = prob * t + (1.0 - prob) * (1.0 - t)
    one_minus_pt = 1.0 - p_t
    loss = ce * one_minus_pt * one_minus_pt
    if alpha >= 0:
        loss = (alpha * t + (1.0 - alpha) * (1.0 - t)) * loss
    loss = loss * valid                                  # mask Q-padding rows
    focal_ref[0, 0] += jnp.sum(loss)

    # ---- cardinality: argmax(-1) != C-1  <=>  max over non-bg >= bg logit ----
    is_bg = class_iota == (C - 1)
    non_bg_max = jnp.max(jnp.where(is_bg, jnp.float32(-1e30), x), axis=2, keepdims=True)
    bg_val = jnp.max(jnp.where(is_bg, x, jnp.float32(-1e30)), axis=2, keepdims=True)
    not_bg = (non_bg_max >= bg_val).astype(jnp.float32) * valid
    card_ref[b, 0] += jnp.sum(not_bg)


def classification_and_cardinality(pred_logits, target_classes, alpha):
    """Fused pass over pred_logits.

    pred_logits    : [B, Q, C] float
    target_classes : [B, Q] int32, value == num_classes means background.
    Returns (focal_sum_scalar, card_pred[B]).
    """
    B, Q, C = pred_logits.shape

    # Tile Q: biggest tile <= 512 rows, minimal padding (to a multiple of 8).
    q8 = _round_up(Q, 8)
    n_tiles = -(-q8 // 512)
    tq = _round_up(-(-q8 // n_tiles), 8)
    q_pad = tq * n_tiles

    logits = pred_logits.astype(jnp.float32)
    cls = target_classes.astype(jnp.int32)
    if q_pad != Q:
        logits = jnp.pad(logits, ((0, 0), (0, q_pad - Q), (0, 0)))
        cls = jnp.pad(cls, ((0, 0), (0, q_pad - Q)), constant_values=-1)
    cls = cls.reshape(B, q_pad, 1)

    kern = functools.partial(_cls_fused_kernel, alpha=alpha)
    focal, card = pl.pallas_call(
        kern,
        grid=(B, q_pad // tq),
        in_specs=[
            pl.BlockSpec((1, tq, C), lambda b, q: (b, q, 0)),
            pl.BlockSpec((1, tq, 1), lambda b, q: (b, q, 0)),
        ],
        out_specs=(_SMEM_SPEC, _SMEM_SPEC),
        out_shape=(jax.ShapeDtypeStruct((1, 1), jnp.float32),
                   jax.ShapeDtypeStruct((B, 1), jnp.float32)),
        compiler_params=pltpu.CompilerParams(
            dimension_semantics=("arbitrary", "arbitrary")),
    )(logits, cls)
    return focal[0, 0], card[:, 0]


# ----------------------------------------------------------------------------
# Matched-box L1 + GIoU kernel (lane-dense [4, N_pad] layout)
# ----------------------------------------------------------------------------
def _box_loss_kernel(src_ref, tgt_ref, mask_ref, l1_ref, giou_ref, *, eps):
    s = src_ref[...]        # (4, Np): rows = cx, cy, w, h
    t = tgt_ref[...]
    m = mask_ref[...]       # (1, Np) validity

    l1_ref[0, 0] = jnp.sum(jnp.abs(s - t) * m)

    def rows(b):
        return b[0:1, :], b[1:2, :], b[2:3, :], b[3:4, :]

    scx, scy, sw, sh = rows(s)
    tcx, tcy, tw, th = rows(t)

    sx0, sy0 = scx - 0.5 * sw, scy - 0.5 * sh
    sx1, sy1 = scx + 0.5 * sw, scy + 0.5 * sh
    tx0, ty0 = tcx - 0.5 * tw, tcy - 0.5 * th
    tx1, ty1 = tcx + 0.5 * tw, tcy + 0.5 * th

    area_s = (sx1 - sx0) * (sy1 - sy0)
    area_t = (tx1 - tx0) * (ty1 - ty0)

    iw = jnp.maximum(jnp.minimum(sx1, tx1) - jnp.maximum(sx0, tx0), 0.0)
    ih = jnp.maximum(jnp.minimum(sy1, ty1) - jnp.maximum(sy0, ty0), 0.0)
    inter = iw * ih
    union = area_s + area_t - inter
    iou = inter / (union + eps)

    cw = jnp.maximum(sx1, tx1) - jnp.minimum(sx0, tx0)
    ch = jnp.maximum(sy1, ty1) - jnp.minimum(sy0, ty0)
    area_c = cw * ch
    giou = iou - (area_c - union) / (area_c + eps)
    giou_ref[0, 0] = jnp.sum((1.0 - giou) * m)


def box_losses(src_boxes, target_boxes):
    """src/target boxes: [N, 4] cxcywh (N may be 0). Returns (l1_sum, giou_sum).

    Padded to a static multiple of 128 matches -> recompiles only when crossing a
    128-match boundary, and empty-match batches never hit a zero-sized block.
    """
    n = int(src_boxes.shape[0])
    n_pad = max(128, _round_up(max(n, 1), 128))

    def lane_dense(b):
        out = jnp.zeros((4, n_pad), jnp.float32)
        if n > 0:
            out = out.at[:, :n].set(jnp.asarray(b, jnp.float32).T)
        return out

    src_t = lane_dense(src_boxes)
    tgt_t = lane_dense(target_boxes)
    mask = (jnp.arange(n_pad, dtype=jnp.int32) < n).astype(jnp.float32).reshape(1, n_pad)

    kern = functools.partial(_box_loss_kernel, eps=1e-9)
    l1, giou = pl.pallas_call(
        kern,
        in_specs=[_VMEM_SPEC, _VMEM_SPEC, _VMEM_SPEC],
        out_specs=(_SMEM_SPEC, _SMEM_SPEC),
        out_shape=(_SCALAR_OUT, _SCALAR_OUT),
    )(src_t, tgt_t, mask)
    return l1[0, 0], giou[0, 0]


# ----------------------------------------------------------------------------
# Matcher (L1 cost on device, tiny greedy assignment on host)
# ----------------------------------------------------------------------------
def greedy_matcher(outputs, targets, group_detr=1):
    # TODO(synk): Hungarian assignment (scipy.optimize.linear_sum_assignment) has no
    # clean Pallas equivalent; deterministic greedy L1-cost matching is used instead.
    pred_boxes = outputs['pred_boxes']
    indices = []
    for b, t in enumerate(targets):
        tb = jnp.asarray(t['boxes'], dtype=jnp.float32)
        nt = int(tb.shape[0])
        if nt == 0:
            indices.append((np.zeros((0,), np.int64), np.zeros((0,), np.int64)))
            continue
        # [Q, Nt] L1 cost computed on-device; only this small matrix crosses to host.
        cost = jnp.sum(jnp.abs(pred_boxes[b][:, None, :] - tb[None, :, :]), axis=-1)
        cost = np.asarray(cost)
        used, src, tgt = set(), [], []
        for j in range(nt):
            for q in np.argsort(cost[:, j], kind='stable'):
                if int(q) not in used:
                    used.add(int(q))
                    src.append(int(q))
                    tgt.append(j)
                    break
        indices.append((np.asarray(src, dtype=np.int64), np.asarray(tgt, dtype=np.int64)))
    return indices


# ----------------------------------------------------------------------------
# SetCriterion
# ----------------------------------------------------------------------------
class SetCriterion:
    def __init__(self, num_classes, matcher, weight_dict, focal_alpha, losses,
                 group_detr=1, sum_group_losses=False):
        self.num_classes = num_classes
        self.matcher = matcher
        self.weight_dict = weight_dict
        self.losses = losses
        self.focal_alpha = focal_alpha
        self.group_detr = group_detr
        self.sum_group_losses = sum_group_losses
        self.training = False  # eval-mode forward (group_detr forced to 1)
        self._fused_cache = {}

    @staticmethod
    def _get_src_permutation_idx(indices):
        batch_idx = np.concatenate([np.full_like(src, i)
                                    for i, (src, _) in enumerate(indices)])
        src_idx = np.concatenate([src for src, _ in indices])
        return batch_idx, src_idx

    # Fused focal + cardinality pass over pred_logits (computed once per forward,
    # shared by loss_labels and loss_cardinality).
    def _fused_classification(self, outputs, targets, indices):
        key = (id(outputs['pred_logits']), id(indices))
        if self._fused_cache.get('key') == key:
            return self._fused_cache['value']

        src_logits = outputs['pred_logits']
        B, Q, _ = src_logits.shape
        batch_idx, src_idx = self._get_src_permutation_idx(indices)
        target_classes_o = np.concatenate(
            [np.asarray(t['labels'])[np.asarray(J)] for t, (_, J) in zip(targets, indices)])

        # default focal-loss branch (use_varifocal / position_supervised / ia_bce = False)
        target_classes = np.full((B, Q), self.num_classes, dtype=np.int32)
        if batch_idx.size:
            target_classes[batch_idx, src_idx] = target_classes_o.astype(np.int32)

        value = classification_and_cardinality(
            src_logits, jnp.asarray(target_classes), alpha=self.focal_alpha)
        self._fused_cache = {'key': key, 'value': value, 'tco': target_classes_o,
                             'bidx': batch_idx, 'sidx': src_idx}
        return value

    def loss_labels(self, outputs, targets, indices, num_boxes, log=True):
        src_logits = outputs['pred_logits']
        focal_sum, _ = self._fused_classification(outputs, targets, indices)
        # sigmoid_focal_loss = loss.mean(1).sum()/num_boxes ; then * Q  ->  sum/num_boxes
        losses = {'loss_ce': focal_sum / num_boxes}

        if log:
            batch_idx = self._fused_cache['bidx']
            src_idx = self._fused_cache['sidx']
            target_classes_o = self._fused_cache['tco']
            matched = src_logits[jnp.asarray(batch_idx), jnp.asarray(src_idx)]
            if matched.shape[0] == 0:
                acc = jnp.float32(0.0)
            else:
                acc = jnp.mean(
                    (jnp.argmax(matched, axis=-1) ==
                     jnp.asarray(target_classes_o)).astype(jnp.float32)) * 100.0
            losses['class_error'] = 100.0 - acc
        return losses

    def loss_cardinality(self, outputs, targets, indices, num_boxes):
        _, card_pred = self._fused_classification(outputs, targets, indices)
        tgt_lengths = jnp.asarray([float(len(t['labels'])) for t in targets],
                                  dtype=jnp.float32)
        card_err = jnp.mean(jnp.abs(card_pred - tgt_lengths))   # F.l1_loss (mean)
        return {'cardinality_error': card_err}

    def loss_boxes(self, outputs, targets, indices, num_boxes):
        batch_idx, src_idx = self._get_src_permutation_idx(indices)
        src_boxes = outputs['pred_boxes'][jnp.asarray(batch_idx), jnp.asarray(src_idx)]
        target_boxes = jnp.concatenate(
            [jnp.asarray(t['boxes']).reshape(-1, 4)[np.asarray(i)]
             for t, (_, i) in zip(targets, indices)], axis=0)
        l1_sum, giou_sum = box_losses(src_boxes, target_boxes)
        return {'loss_bbox': l1_sum / num_boxes, 'loss_giou': giou_sum / num_boxes}

    # TODO(synk): loss_masks (F.interpolate bilinear + dice) not exercised here.

    def get_loss(self, loss, outputs, targets, indices, num_boxes, **kwargs):
        loss_map = {'labels': self.loss_labels,
                    'cardinality': self.loss_cardinality,
                    'boxes': self.loss_boxes}
        assert loss in loss_map
        return loss_map[loss](outputs, targets, indices, num_boxes, **kwargs)

    def forward(self, outputs, targets):
        group_detr = self.group_detr if self.training else 1
        outputs_without_aux = {k: v for k, v in outputs.items() if k != 'aux_outputs'}
        self._fused_cache = {}
        indices = self.matcher(outputs_without_aux, targets, group_detr=group_detr)
        num_boxes = sum(len(t['labels']) for t in targets)
        if not self.sum_group_losses:
            num_boxes = num_boxes * group_detr
        # TODO(synk): distributed all_reduce / world_size of num_boxes omitted (single host).
        num_boxes = max(float(num_boxes), 1.0)
        losses = {}
        for loss in self.losses:
            losses.update(self.get_loss(loss, outputs, targets, indices, num_boxes))
        # TODO(synk): aux_outputs / enc_outputs loops omitted (same losses, repeated).
        return losses


# ----------------------------------------------------------------------------
if __name__ == "__main__":
    key = jax.random.PRNGKey(0)
    B, Q, C = 2, 8, 4
    k1, k2, k3, k4 = jax.random.split(key, 4)

    pred_logits = jax.random.normal(k1, (B, Q, C), dtype=jnp.float32)
    cxcy = jax.random.uniform(k2, (B, Q, 2), minval=0.2, maxval=0.8)
    wh = jax.random.uniform(k3, (B, Q, 2), minval=0.05, maxval=0.3)
    pred_boxes = jnp.concatenate([cxcy, wh], axis=-1).astype(jnp.float32)

    # targets: batch 0 -> 3 boxes, batch 1 -> 2 boxes
    n_per_batch = [3, 2]
    tkeys = jax.random.split(k4, 2 * len(n_per_batch))
    targets = []
    for b, n in enumerate(n_per_batch):
        lab = jax.random.randint(tkeys[2 * b], (n,), 0, C)
        tcxcy = jax.random.uniform(tkeys[2 * b + 1], (n, 2), minval=0.25, maxval=0.75)
        twh = jnp.full((n, 2), 0.2, dtype=jnp.float32)
        boxes = jnp.concatenate([tcxcy, twh], axis=-1).astype(jnp.float32)
        targets.append({'labels': np.asarray(lab), 'boxes': np.asarray(boxes)})

    criterion = SetCriterion(
        num_classes=C,
        matcher=greedy_matcher,
        weight_dict={'loss_ce': 1.0, 'loss_bbox': 5.0, 'loss_giou': 2.0},
        focal_alpha=0.25,
        losses=['labels', 'cardinality', 'boxes'],
    )

    outputs = {'pred_logits': pred_logits, 'pred_boxes': pred_boxes}
    losses = criterion.forward(outputs, targets)

    for name, val in losses.items():
        val = jax.block_until_ready(val)
        assert np.isfinite(np.asarray(val)), f"non-finite loss {name}"

    print("KERNEL_OK")
</pallas_src>

<mosaic_0001>
module attributes {stable_mosaic.version = 11 : i64} {
  func.func @_cls_fused_kernel(%arg0: i32, %arg1: i32, %arg2: memref<1x8x4xf32, #tpu.memory_space<vmem>>, %arg3: memref<1x8x1xi32, #tpu.memory_space<vmem>>, %arg4: memref<1x1xf32, #tpu.memory_space<smem>>, %arg5: memref<2x1xf32, #tpu.memory_space<smem>>) attributes {dimension_semantics = [#tpu.dimension_semantics<arbitrary>, #tpu.dimension_semantics<arbitrary>], iteration_bounds = array<i64: 2, 1>, scalar_prefetch = 0 : i64, scratch_operands = 0 : i64, tpu.core_type = #tpu.core_type<tc>, window_params = [{transform_indices = @transform_0, window_bounds = array<i64: 1, 8, 4>}, {transform_indices = @transform_1, window_bounds = array<i64: 1, 8, 1>}, {transform_indices = @transform_2, window_bounds = array<i64: 1, 1>}, {transform_indices = @transform_3, window_bounds = array<i64: 2, 1>}]} {
    %c0_i32 = arith.constant 0 : i32
    %0 = arith.cmpi eq, %arg0, %c0_i32 : i32
    %c0_i32_0 = arith.constant 0 : i32
    %1 = arith.cmpi eq, %arg1, %c0_i32_0 : i32
    %2 = arith.andi %0, %1 : i1
    %3 = arith.extui %2 : i1 to i32
    %c0_i32_1 = arith.constant 0 : i32
    %4 = arith.cmpi ne, %3, %c0_i32_1 : i32
    scf.if %4 {
      %cst_32 = arith.constant 0.000000e+00 : f32
      %c0_33 = arith.constant 0 : index
      %c0_34 = arith.constant 0 : index
      %89 = memref.load %arg4[%c0_33, %c0_34] : memref<1x1xf32, #tpu.memory_space<smem>>
      memref.store %cst_32, %arg4[%c0_33, %c0_34] : memref<1x1xf32, #tpu.memory_space<smem>>
    } else {
    }
    %c0_i32_2 = arith.constant 0 : i32
    %5 = arith.cmpi eq, %arg1, %c0_i32_2 : i32
    %6 = arith.extui %5 : i1 to i32
    %c0_i32_3 = arith.constant 0 : i32
    %7 = arith.cmpi ne, %6, %c0_i32_3 : i32
    scf.if %7 {
      %cst_32 = arith.constant 0.000000e+00 : f32
      %89 = arith.index_cast %arg0 : i32 to index
      %c0_33 = arith.constant 0 : index
      %90 = memref.load %arg5[%89, %c0_33] : memref<2x1xf32, #tpu.memory_space<smem>>
      memref.store %cst_32, %arg5[%89, %c0_33] : memref<2x1xf32, #tpu.memory_space<smem>>
    } else {
    }
    %c0 = arith.constant 0 : index
    %c0_4 = arith.constant 0 : index
    %c0_5 = arith.constant 0 : index
    %8 = vector.load %arg2[%c0, %c0_4, %c0_5] : memref<1x8x4xf32, #tpu.memory_space<vmem>>, vector<1x8x4xf32>
    %c0_6 = arith.constant 0 : index
    %c0_7 = arith.constant 0 : index
    %c0_8 = arith.constant 0 : index
    %9 = vector.load %arg3[%c0_6, %c0_7, %c0_8] : memref<1x8x1xi32, #tpu.memory_space<vmem>>, vector<1x8x1xi32>
    %10 = tpu.iota {dimensions = array<i32: 2>} : vector<1x8x4xi32>
    %11 = vector.broadcast %9 : vector<1x8x1xi32> to vector<1x8x4xi32>
    %12 = arith.cmpi eq, %10, %11 : vector<1x8x4xi32>
    %13 = arith.extui %12 : vector<1x8x4xi1> to vector<1x8x4xi32>
    %14 = arith.sitofp %13 : vector<1x8x4xi32> to vector<1x8x4xf32>
    %c0_i32_9 = arith.constant 0 : i32
    %15 = vector.broadcast %c0_i32_9 : i32 to vector<1x8x1xi32>
    %16 = arith.cmpi sge, %9, %15 : vector<1x8x1xi32>
    %17 = arith.extui %16 : vector<1x8x1xi1> to vector<1x8x1xi32>
    %18 = arith.sitofp %17 : vector<1x8x1xi32> to vector<1x8x1xf32>
    %19 = math.absf %8 : vector<1x8x4xf32>
    %cst = arith.constant 0.000000e+00 : f32
    %20 = vector.broadcast %cst : f32 to vector<1x8x4xf32>
    %21 = arith.subf %20, %19 : vector<1x8x4xf32>
    %22 = math.exp %21 : vector<1x8x4xf32>
    %cst_10 = arith.constant 1.000000e+00 : f32
    %23 = vector.broadcast %cst_10 : f32 to vector<1x8x4xf32>
    %24 = arith.addf %23, %22 : vector<1x8x4xf32>
    %25 = tpu.reciprocal %24 {approx = true} : vector<1x8x4xf32> -> vector<1x8x4xf32>
    %cst_11 = arith.constant 0.000000e+00 : f32
    %26 = vector.broadcast %cst_11 : f32 to vector<1x8x4xf32>
    %27 = arith.cmpf oge, %8, %26 : vector<1x8x4xf32>
    %28 = arith.mulf %22, %25 : vector<1x8x4xf32>
    %29 = arith.select %27, %25, %28 : vector<1x8x4xi1>, vector<1x8x4xf32>
    %cst_12 = arith.constant 0.000000e+00 : f32
    %30 = vector.broadcast %cst_12 : f32 to vector<1x8x4xf32>
    %31 = arith.maximumf %8, %30 : vector<1x8x4xf32>
    %32 = arith.mulf %8, %14 : vector<1x8x4xf32>
    %33 = arith.subf %31, %32 : vector<1x8x4xf32>
    %cst_13 = arith.constant 1.000000e+00 : f32
    %34 = vector.broadcast %cst_13 : f32 to vector<1x8x4xf32>
    %35 = arith.addf %34, %22 : vector<1x8x4xf32>
    %36 = math.log %35 : vector<1x8x4xf32>
    %37 = arith.addf %33, %36 : vector<1x8x4xf32>
    %38 = arith.mulf %29, %14 : vector<1x8x4xf32>
    %cst_14 = arith.constant 1.000000e+00 : f32
    %39 = vector.broadcast %cst_14 : f32 to vector<1x8x4xf32>
    %40 = arith.subf %39, %29 : vector<1x8x4xf32>
    %cst_15 = arith.constant 1.000000e+00 : f32
    %41 = vector.broadcast %cst_15 : f32 to vector<1x8x4xf32>
    %42 = arith.subf %41, %14 : vector<1x8x4xf32>
    %43 = arith.mulf %40, %42 : vector<1x8x4xf32>
    %44 = arith.addf %38, %43 : vector<1x8x4xf32>
    %cst_16 = arith.constant 1.000000e+00 : f32
    %45 = vector.broadcast %cst_16 : f32 to vector<1x8x4xf32>
    %46 = arith.subf %45, %44 : vector<1x8x4xf32>
    %47 = arith.mulf %37, %46 : vector<1x8x4xf32>
    %48 = arith.mulf %47, %46 : vector<1x8x4xf32>
    %cst_17 = arith.constant 2.500000e-01 : f32
    %49 = vector.broadcast %cst_17 : f32 to vector<1x8x4xf32>
    %50 = arith.mulf %49, %14 : vector<1x8x4xf32>
    %cst_18 = arith.constant 1.000000e+00 : f32
    %51 = vector.broadcast %cst_18 : f32 to vector<1x8x4xf32>
    %52 = arith.subf %51, %14 : vector<1x8x4xf32>
    %cst_19 = arith.constant 7.500000e-01 : f32
    %53 = vector.broadcast %cst_19 : f32 to vector<1x8x4xf32>
    %54 = arith.mulf %53, %52 : vector<1x8x4xf32>
    %55 = arith.addf %50, %54 : vector<1x8x4xf32>
    %56 = arith.mulf %55, %48 : vector<1x8x4xf32>
    %57 = vector.broadcast %18 : vector<1x8x1xf32> to vector<1x8x4xf32>
    %58 = arith.mulf %56, %57 : vector<1x8x4xf32>
    %c0_20 = arith.constant 0 : index
    %c0_21 = arith.constant 0 : index
    %59 = memref.load %arg4[%c0_20, %c0_21] : memref<1x1xf32, #tpu.memory_space<smem>>
    %60 = vector.shape_cast %58 : vector<1x8x4xf32> to vector<1x1x8x4xf32>
    %cst_22 = arith.constant dense<0.000000e+00> : vector<1xf32>
    %61 = vector.multi_reduction <add>, %60, %cst_22 [1, 2, 3] : vector<1x1x8x4xf32> to vector<1xf32>
    %62 = vector.shape_cast %61 : vector<1xf32> to vector<1x1x1x1xf32>
    %63 = vector.extract %62[0, 0, 0, 0] : f32 from vector<1x1x1x1xf32>
    %64 = arith.addf %59, %63 : f32
    %c0_23 = arith.constant 0 : index
    %c0_24 = arith.constant 0 : index
    %65 = memref.load %arg4[%c0_23, %c0_24] : memref<1x1xf32, #tpu.memory_space<smem>>
    memref.store %64, %arg4[%c0_23, %c0_24] : memref<1x1xf32, #tpu.memory_space<smem>>
    %c3_i32 = arith.constant 3 : i32
    %66 = vector.broadcast %c3_i32 : i32 to vector<1x8x4xi32>
    %67 = arith.cmpi eq, %10, %66 : vector<1x8x4xi32>
    %cst_25 = arith.constant -1.000000e+30 : f32
    %68 = vector.broadcast %cst_25 : f32 to vector<1x8x4xf32>
    %69 = arith.select %67, %68, %8 : vector<1x8x4xi1>, vector<1x8x4xf32>
    %cst_26 = arith.constant dense<0xFF800000> : vector<1x8xf32>
    %70 = vector.multi_reduction <maximumf>, %69, %cst_26 [2] : vector<1x8x4xf32> to vector<1x8xf32>
    %71 = vector.shape_cast %70 : vector<1x8xf32> to vector<1x8x1xf32>
    %cst_27 = arith.constant -1.000000e+30 : f32
    %72 = vector.broadcast %cst_27 : f32 to vector<1x8x4xf32>
    %73 = arith.select %67, %8, %72 : vector<1x8x4xi1>, vector<1x8x4xf32>
    %cst_28 = arith.constant dense<0xFF800000> : vector<1x8xf32>
    %74 = vector.multi_reduction <maximumf>, %73, %cst_28 [2] : vector<1x8x4xf32> to vector<1x8xf32>
    %75 = vector.shape_cast %74 : vector<1x8xf32> to vector<1x8x1xf32>
    %76 = arith.cmpf oge, %71, %75 : vector<1x8x1xf32>
    %77 = arith.extui %76 : vector<1x8x1xi1> to vector<1x8x1xi32>
    %78 = arith.sitofp %77 : vector<1x8x1xi32> to vector<1x8x1xf32>
    %79 = arith.mulf %78, %18 : vector<1x8x1xf32>
    %80 = arith.index_cast %arg0 : i32 to index
    %c0_29 = arith.constant 0 : index
    %81 = memref.load %arg5[%80, %c0_29] : memref<2x1xf32, #tpu.memory_space<smem>>
    %82 = vector.shape_cast %79 : vector<1x8x1xf32> to vector<1x1x8x1xf32>
    %cst_30 = arith.constant dense<0.000000e+00> : vector<1xf32>
    %83 = vector.multi_reduction <add>, %82, %cst_30 [1, 2, 3] : vector<1x1x8x1xf32> to vector<1xf32>
    %84 = vector.shape_cast %83 : vector<1xf32> to vector<1x1x1x1xf32>
    %85 = vector.extract %84[0, 0, 0, 0] : f32 from vector<1x1x1x1xf32>
    %86 = arith.addf %81, %85 : f32
    %87 = arith.index_cast %arg0 : i32 to index
    %c0_31 = arith.constant 0 : index
    %88 = memref.load %arg5[%87, %c0_31] : memref<2x1xf32, #tpu.memory_space<smem>>
    memref.store %86, %arg5[%87, %c0_31] : memref<2x1xf32, #tpu.memory_space<smem>>
    return
  }
  func.func @transform_0(%arg0: i32, %arg1: i32) -> (i32, i32, i32) {
    %c0_i32 = arith.constant 0 : i32
    %c0_i32_0 = arith.constant 0 : i32
    return %arg0, %arg1, %c0_i32 : i32, i32, i32
  }
  func.func @transform_1(%arg0: i32, %arg1: i32) -> (i32, i32, i32) {
    %c0_i32 = arith.constant 0 : i32
    %c0_i32_0 = arith.constant 0 : i32
    return %arg0, %arg1, %c0_i32 : i32, i32, i32
  }
  func.func @transform_2(%arg0: i32, %arg1: i32) -> (i32, i32) {
    %c0_i32 = arith.constant 0 : i32
    %c0_i32_0 = arith.constant 0 : i32
    %c0_i32_1 = arith.constant 0 : i32
    return %c0_i32, %c0_i32_0 : i32, i32
  }
  func.func @transform_3(%arg0: i32, %arg1: i32) -> (i32, i32) {
    %c0_i32 = arith.constant 0 : i32
    %c0_i32_0 = arith.constant 0 : i32
    %c0_i32_1 = arith.constant 0 : i32
    return %c0_i32, %c0_i32_0 : i32, i32
  }
}

</mosaic_0001>

<bundles_post_ra>
// kernel: tpu_custom_call.1
= control target key start
LH: loop header
LB: loop body
LE: loop exit
PB: predicated region body
PF: predicated region fallthrough
CT: control target
= control target key end

     0   :  { %9 = vsyncpa [#allocation3], 0  ;;  %s639_s0 = inlined_call_operand.vmem [shape: f32[2,8,4], index: 0, kind: input, shape index: {}]   ;;  %s640_s1 = inlined_call_operand.vmem [shape: s32[2,8,1], index: 1, kind: input, shape index: {}]   ;;  %s641_s2 = inlined_call_operand.hbm [shape: f32[1,1], index: 2, kind: output, shape index: {0}]   ;;  %s642_s3 = inlined_call_operand.vmem [shape: f32[2,1], index: 3, kind: output, shape index: {1}]  }
   0x1   :  { %10 = vsyncpa [#allocation4], 0  ;;  %s568_s12 = smov 0   ;;  %s570_s13 = smov 0  }
   0x2   :  { %s572_s14 = smov 0  }
   0x3 LB: > { %s410_s15 = sadd.s32 4294967295, %s541_s14   ;;  %s28_s16 = sadd.s32 1, %s537_s13  ;;  %s541_s14 = sphi %s572_s14, %s16_s14   ;;  %s537_s13 = sphi %s570_s13, %s645_s13   ;;  %s533_s12 = sphi %s568_s12, %s644_s12  }
   0x4   : > { %p30_p0 = scmp.ge.s32.totalorder %s28_s16, 2  ;;  %p413_p1 = scmp.ge.s32.totalorder %s541_s14, 1 }
   0x5   : > { %p162_p2 = scmp.lt.s32.totalorder %s541_s14, 3 }
   0x6   : > { %s647_s16 = smov (%p30_p0, %s28_s16), 0 }
   0x7   : > { %p163_p3 = pnand %p413_p1, %p162_p2 }
   0x8   : > { %p190_p4 = scmp.lt.s32.totalorder (!%p163_p3), %s533_s12, 1  ;;  %p204_p5 = scmp.eq.s32.totalorder (!%p163_p3), %s533_s12, 0 }
   0x9   : > { %166 = sbr.rel (%p163_p3) target bundleno = 369 (0x171), region = 28  ;;  %s545_s25 = smov (!%p163_p3), 0.0  }
   0xa   : > { %s417_s26 = sshll.u32 (!%p163_p3), %s533_s12, 7  ;;  %s314_s4 = sshll.u32 (!%p163_p3), %s641_s2, 4  ;;  %s315_s4 = int_to_ptr.hbm [resolvable:$true] %s314_s4 }
   0xb   : > { %s602_s27 = scalar_lea.smem (!%p163_p3), [#allocation5], %s417_s26  ;;  %p610_p6 = scmp.eq.s32.totalorder (!%p163_p3), %s410_s15, 1 }
   0xc   : > { %217 = sst [smem:[%s602_s27]] (!%p163_p3), %s545_s25  ;;  %s546_s8 = smov (!%p163_p3), [#allocation2]  }
   0xd   : > { %s293_s9 = sld [smem:[#allocation5 + %s417_s26]] (!%p163_p3) }
   0xe   : > { %v220_v0 = vlaneseq  ;;  %v543_v1 = vmov 0   ;;  %s191_s17 = scalar_select %p190_p4, %s533_s12, 1  ;;  %vm265_vm1 = vcmask 31744   ;;  %v544_v7 = vmov 0.0  }
   0xf   : > { %475 = vset.pattern.permute.xlu0 %v543_v1  ;;  %476 = vset.pattern.permute.xlu1 %v543_v1  ;;  %vm294_vm6 = vcmask 7168   ;;  %433 = sst [smem:[#allocation2]] (%p204_p5), %s545_s25  ;;  %s324_s12 = sshll.u32 %s642_s3, 4  ;;  %s325_s12 = int_to_ptr.vmem [resolvable:$true] %s324_s12 }
  0x10   : > { %v221_v2 = vand.u32 127, %v220_v0  ;;  %s414_s18 = sshll.u32 %s191_s17, 3  ;;  %s264_s28 = sld [smem:[#allocation2]] }
  0x11   : > { %s203_s21 = scalar_lea.vmem %s640_s1, %s414_s18  ;;  %s196_s24 = scalar_lea.vmem %s639_s0, %s414_s18 }
  0x12   : > { %vm279_vm0 = vcmp.eq.s32.totalorder %v221_v2, 3  ;;  %v219_v3 = vld [vmem:[%s203_s21] sm:$0xff]  ;;  %s547_s18 = smov [#allocation5]  }
  0x13   : > { %v218_v4 = vld [vmem:[%s196_s24] sm:$0xff]  ;;  %223 = vperm.xlu0 %475, %v219_v3   ;;  %vm228_vm2 = vcmp.ge.s32.totalorder %v219_v3, 0 }
  0x14   : > { %v284_v5 = vsel %vm279_vm0, %v218_v4, -1e+30  ;;  %v419_v8 = vsel %vm228_vm2, 1.0, %v544_v7  ;;  %v280_v9 = vsel %vm279_vm0, -1e+30, %v218_v4  ;;  %vm237_vm3 = vcmp.ge.f32.partialorder %v218_v4, 0.0 }
  0x15   : > { %v285_v6 = vsel %vm265_vm1, %v284_v5, -inf  ;;  %v281_v10 = vsel %vm265_vm1, %v280_v9, -inf  ;;  %v231_v11 = vand.u32 2147483647, %v218_v4  ;;  %v240_v24 = vmax.f32 %v218_v4, 0.0 }
  0x16   : > { %286 = vmax.xlane.f32.xlu1 %v285_v6 }
  0x17   : > { %v232_v12 = vsub.f32 0.0, %v231_v11 }
  0x19   : > { %v233_v13 = vmul.f32 1.442695, %v232_v12 }
  0x1b   : > { %477 = vpow2.f32 %v233_v13 }
  0x21   : > { %v478_v14 = vpop.eup %477 }
  0x22   : > { %v235_v15 = vadd.f32 1.0, %v478_v14 }
  0x24   : > { %479 = vrcp.f32 %v235_v15 }
  0x25   : > { %481 = vlog2.f32 %v235_v15 }
  0x2a   : > { %v480_v16 = vpop.eup %479 }
  0x2b   : > { %v238_v17 = vmul.f32 %v480_v16, %v478_v14  ;;  %v482_v27 = vpop.eup %481 }
  0x2c   : > { %v244_v30 = vmul.f32 0.6931472, %v482_v27 }
  0x2d   : > { %v239_v18 = vsel %vm237_vm3, %v480_v16, %v238_v17 }
  0x2e   : > { %v247_v21 = vsub.f32 1.0, %v239_v18 }
  0x2f   : > { %260 = vperm.xlu1 %476, %v419_v8  }
  0x3d   : > { %282 = vmax.xlane.f32.xlu0 %v281_v10 }
  0x85   : > { %v224_v19 = vpop.permute.xlu0 %223 }
  0x86   : > { %vm225_vm4 = vcmp.eq.s32.totalorder %v221_v2, %v224_v19 }
  0x87   : > { %v418_v20 = vsel %vm225_vm4, 1.0, %v544_v7 }
  0x88   : > { %v248_v22 = vsub.f32 1.0, %v418_v20  ;;  %v241_v25 = vmul.f32 %v418_v20, %v218_v4  ;;  %v246_v26 = vmul.f32 %v418_v20, %v239_v18  ;;  %v254_v36 = vmul.f32 0.25, %v418_v20 }
  0x89   : > { %v287_v34 = vpop.xlane.xlu1 %286 }
  0x8a   : > { %v249_v23 = vmul.f32 %v248_v22, %v247_v21  ;;  %v242_v29 = vsub.f32 %v240_v24, %v241_v25  ;;  %v255_v35 = vmul.f32 0.75, %v248_v22 }
  0x8c   : > { %v250_v28 = vadd.f32 %v249_v23, %v246_v26  ;;  %v245_v32 = vadd.f32 %v244_v30, %v242_v29  ;;  %v256_v38 = vadd.f32 %v255_v35, %v254_v36 }
  0x8e   : > { %v251_v31 = vsub.f32 1.0, %v250_v28 }
  0x90   : > { %v252_v33 = vmul.f32 %v251_v31, %v245_v32 }
  0x92   : > { %v253_v37 = vmul.f32 %v252_v33, %v251_v31 }
  0x94   : > { %v257_v39 = vmul.f32 %v256_v38, %v253_v37 }
  0xa1   : > { %v261_v40 = vpop.permute.xlu1 %260 }
  0xa2   : > { %v263_v41 = vmul.f32 %v261_v40, %v257_v39 }
  0xa4   : > { %v266_v42 = vsel %vm265_vm1, %v263_v41, 0.0 }
  0xa5   : > { %267 = vadd.xlane.f32.xlu2 %v266_v42 }
  0xb0   : > { %v283_v43 = vpop.xlane.xlu0 %282 }
  0xb1   : > { %vm288_vm5 = vcmp.ge.f32.partialorder %v283_v43, %v287_v34 }
  0xb2   : > { %v420_v44 = vsel %vm288_vm5, 1.0, %v544_v7 }
  0xb3   : > { %v291_v45 = vmul.f32 %v420_v44, %v419_v8 }
  0xb5   : > { %v295_v46 = vsel %vm294_vm6, %v291_v45, 0.0 }
  0xb6   : > { %296 = vadd.xlane.f32.xlu2 %v295_v46 }
 0x118   : > { %v268_v47 = vpop.xlane.xlu2 %267 }
 0x119   : > { %v269_v48 = vrot.slane %v268_v47, 4 }
 0x11b   : > { %v270_v49 = vadd.f32 %v269_v48, %v268_v47 }
 0x11d   : > { %v271_v50 = vrot.slane %v270_v49, 2 }
 0x11f   : > { %v272_v51 = vadd.f32 %v271_v50, %v270_v49 }
 0x121   : > { %v273_v52 = vrot.slane %v272_v51, 1 }
 0x123   : > { %v274_v53 = vadd.f32 %v273_v52, %v272_v51 }
 0x125   : > { %429 = vpush %v274_v53 }
 0x129   : > { %v297_v54 = vpop.xlane.xlu2 %296 }
 0x12a   : > { %v298_v55 = vrot.slane %v297_v54, 4 }
 0x12c   : > { %v299_v56 = vadd.f32 %v298_v55, %v297_v54 }
 0x12e   : > { %v300_v57 = vrot.slane %v299_v56, 2 }
 0x130   : > { %v301_v58 = vadd.f32 %v300_v57, %v299_v56 }
 0x132   : > { %v302_v59 = vrot.slane %v301_v58, 1 }
 0x134   : > { %v303_v60 = vadd.f32 %v302_v59, %v301_v58 }
 0x136   : > { %431 = vpush %v303_v60 }
 0x156   : > { %s430_s6 = spop %429 }
 0x157   : > { %s276_s7 = sadd.f32 %s430_s6, %s264_s28 }
 0x159   : > { %278 = sst [smem:[#allocation2]] %s276_s7 }
 0x15a   : > { %435 = dma.smem_to_hbm (%p610_p6), %s546_s8, 16, %s315_s4, [#allocation3]  }
 0x167   : > { %s432_s17 = spop %431 }
 0x168   : > { %s305_s15 = sadd.f32 %s432_s17, %s293_s9 }
 0x16a   : > { %307 = sst [smem:[%s602_s27]] %s305_s15 }
 0x16b   : > { %437 = dma.smem_to_vmem (%p610_p6), %s547_s18, 32, %s325_s12, [#allocation4]  }
 0x16c   : > { %524 = dma.done.wait (%p610_p6), [#allocation3], 16  }
 0x16d   : > { %526 = vsyncadd (%p610_p6), [#allocation3], 4294967280 }
 0x16e   : > { %528 = dma.done.wait (%p610_p6), [#allocation4], 32  }
 0x16f   : > { %530 = vsyncadd (%p610_p6), [#allocation4], 4294967264 }
 0x170   : > { %338 = sfence }
 0x171 PF: > { %s16_s14 = sadd.s32 1, %s541_s14   ;;  %s644_s12 = smov %s537_s13 }
 0x172   : > { %p13_p7 = scmp.ge.s32.totalorder %s16_s14, 4   ;;  %s645_s13 = smov %s647_s16 }
 0x174   :  { %15 = sbr.rel (!%p13_p7) target bundleno = 3 (0x3), region = 79 }
 0x179   :  { %344 = vsyncpa [#allocation3], 1 }
 0x17a   :  { %346 = vsyncpa [#allocation3 + $0x1], 1 }
 0x17b   :  { %347 = vsyncpa [#allocation4], 1 }
 0x17c   :  { %349 = vsyncpa [#allocation4 + $0x1], 1 }

</bundles_post_ra>
